<compile_context>
chip_gen: v5e
topology: v5e:2x2
jax: 0.10.0
libtpu: 0.0.40
codegen_flags: <defaults>
</compile_context>

<pallas_src>
import functools

import jax
import jax.numpy as jnp
from jax.experimental import pallas as pl
from jax.experimental.pallas import tpu as pltpu


def _round_up(x, m):
    return ((x + m - 1) // m) * m


def _round_down(x, m):
    return max(m, (x // m) * m)


def _sublane(dtype):
    # Packed sublane granularity: 8 rows for 32-bit, 16 for 16-bit, 32 for 8-bit.
    return max(8, 32 // jnp.dtype(dtype).itemsize)


def _tm_linear_kernel(x_ref, w_ref, b_ref, o_ref, *, compute_dtype):
    # x_ref: (tm, f*c_z)  w_ref: (f*c_z, f*no_bins)  b_ref: (1, f*no_bins) f32
    # In-kernel downcast (VPU has huge slack here); no-op when compute_dtype
    # matches the input dtype, and no extra HBM pass either way.
    x = x_ref[...].astype(compute_dtype)
    acc = jnp.dot(x, w_ref[...], preferred_element_type=jnp.float32)
    o_ref[...] = (acc + b_ref[...]).astype(o_ref.dtype)


def _choose_fold(M, c_z, no_bins, w_itemsize):
    """Rows folded into the lane dim so the output block is 128 lanes wide."""
    if no_bins >= 128 or 128 % no_bins != 0:
        return 1
    fold = 128 // no_bins  # power of two
    # Require fold | M (keeps the reshape metadata-only) and keep the
    # block-diagonal weight replica small.
    while fold > 1 and (M % fold != 0
                        or fold * fold * c_z * no_bins * w_itemsize > (4 << 20)):
        fold //= 2
    return fold


def _choose_tm(m_rows, row_in_bytes, row_out_bytes, sublane,
               target_block_bytes, vmem_budget_bytes=20 << 20, min_grid=4):
    # Big tiles to amortize the ~0.35us/step grid overhead (HBM-bound kernel).
    tm = _round_down(target_block_bytes // max(1, row_in_bytes), sublane)
    # Stay inside a conservative double-buffered VMEM budget (in + out blocks).
    per_row = 2 * (row_in_bytes + row_out_bytes)
    tm = min(tm, _round_down(vmem_budget_bytes // per_row, sublane))
    # Keep >= min_grid steps when M is large enough so v7x's 2 TCs share work.
    if m_rows >= min_grid * sublane:
        tm = min(tm, _round_up(-(-m_rows // min_grid), sublane))
    return max(sublane, tm)


@functools.partial(
    jax.jit, static_argnames=("compute_dtype", "out_dtype", "target_block_bytes"))
def tm_score_head_forward(z, weight, bias, *, compute_dtype=None, out_dtype=None,
                          target_block_bytes=4 << 20):
    """
    Args:
        z:      [*, N_res, N_res, c_z] pairwise embedding
        weight: [no_bins, c_z]   (PyTorch nn.Linear layout)
        bias:   [no_bins]
        compute_dtype: dtype for MXU inputs (cast in-kernel); default z.dtype.
        out_dtype:     logits dtype; default z.dtype.
        target_block_bytes: target x-block size per grid step (bandwidth knob).
    Returns:
        [*, N_res, N_res, no_bins] logits
    """
    *lead, c_z = z.shape
    no_bins = weight.shape[0]
    if compute_dtype is None:
        compute_dtype = z.dtype
    if out_dtype is None:
        out_dtype = z.dtype

    M = 1
    for d in lead:
        M *= d

    in_itemsize = jnp.dtype(z.dtype).itemsize
    out_itemsize = jnp.dtype(out_dtype).itemsize
    w_itemsize = jnp.dtype(compute_dtype).itemsize

    # Lane-densify the output (and, as a side effect, narrow-c_z inputs) by
    # folding `fold` consecutive rows into the lane dimension.
    fold = _choose_fold(M, c_z, no_bins, w_itemsize)
    m_rows = M // fold
    kf = fold * c_z        # folded reduction dim
    nf = fold * no_bins    # folded (128-lane-dense) output dim

    # Metadata-only reshape; NO dtype cast of the big tensor in the wrapper.
    x = z.reshape(m_rows, kf)

    # Small params: transpose / cast / block-diagonal replicate in the wrapper.
    w = jnp.transpose(weight).astype(compute_dtype)            # (c_z, no_bins)
    if fold > 1:
        eye = jnp.eye(fold, dtype=compute_dtype)
        w = jnp.einsum("fg,kn->fkgn", eye, w).reshape(kf, nf)  # block-diagonal
    b = jnp.tile(bias.astype(jnp.float32).reshape(1, no_bins), (1, fold))  # (1, nf)

    sublane = max(_sublane(z.dtype), _sublane(out_dtype))
    row_in_bytes = kf * in_itemsize
    row_out_bytes = nf * out_itemsize
    tm = _choose_tm(m_rows, row_in_bytes, row_out_bytes, sublane,
                    target_block_bytes)
    tm_eff = min(tm, m_rows)            # full-dim block for tiny M (always legal)
    grid = (pl.cdiv(m_rows, tm_eff),)   # ragged last block masked by Pallas

    # TODO(synk): if a deployment ever uses no_bins >= 128 with c_z < 128, the
    # input block stays lane-sparse; fold on the input side only in that case.

    cost = pl.CostEstimate(
        flops=2 * m_rows * kf * nf,
        transcendentals=0,
        bytes_accessed=(M * c_z * in_itemsize
                        + kf * nf * w_itemsize
                        + M * no_bins * out_itemsize),
    )

    kernel = functools.partial(_tm_linear_kernel, compute_dtype=compute_dtype)

    out = pl.pallas_call(
        kernel,
        out_shape=jax.ShapeDtypeStruct((m_rows, nf), out_dtype),
        grid_spec=pltpu.PrefetchScalarGridSpec(
            num_scalar_prefetch=0,
            grid=grid,
            in_specs=[
                pl.BlockSpec((tm_eff, kf), lambda i: (i, 0)),   # x tile
                pl.BlockSpec((kf, nf), lambda i: (0, 0)),       # resident W
                pl.BlockSpec((1, nf), lambda i: (0, 0)),        # resident bias
            ],
            out_specs=pl.BlockSpec((tm_eff, nf), lambda i: (i, 0)),
        ),
        compiler_params=pltpu.CompilerParams(
            dimension_semantics=("parallel",),      # megacore split over rows
            vmem_limit_bytes=32 * 1024 * 1024,
        ),
        cost_estimate=cost,
    )(x, w, b)

    return out.reshape(*lead, no_bins)


def _ref(z, weight, bias):
    return jnp.einsum("...c,nc->...n", z, weight) + bias


if __name__ == "__main__":
    key = jax.random.PRNGKey(0)
    kz, kw, kb = jax.random.split(key, 3)

    # ---- Small module-consistent shapes: batch=2, N_res=8, c_z=32, no_bins=16
    batch, n_res, c_z, no_bins = 2, 8, 32, 16
    z = jax.random.normal(kz, (batch, n_res, n_res, c_z), dtype=jnp.float32)
    weight = 0.02 * jax.random.normal(kw, (no_bins, c_z), dtype=jnp.float32)
    bias = 0.1 * jax.random.normal(kb, (no_bins,), dtype=jnp.float32)

    logits = tm_score_head_forward(z, weight, bias)
    jax.block_until_ready(logits)
    ref = _ref(z, weight, bias)
    assert logits.shape == (batch, n_res, n_res, no_bins), logits.shape
    assert jnp.allclose(logits, ref, atol=1e-5, rtol=1e-5)

    # ---- bf16 compute path (cast happens inside the kernel; no extra HBM pass)
    logits_bf16 = tm_score_head_forward(z, weight, bias,
                                        compute_dtype=jnp.bfloat16)
    jax.block_until_ready(logits_bf16)
    assert jnp.allclose(logits_bf16, ref, atol=3e-2, rtol=3e-2)

    # ---- Ragged multi-step grid with fold>1 (forces tm < m_rows, last block
    #      partially full) to exercise Pallas boundary masking.
    n2 = 12
    z2 = jax.random.normal(kz, (1, n2, n2, c_z), dtype=jnp.float32)
    logits2 = tm_score_head_forward(z2, weight, bias, target_block_bytes=8 * 1024)
    jax.block_until_ready(logits2)
    assert jnp.allclose(logits2, _ref(z2, weight, bias), atol=1e-5, rtol=1e-5)

    # ---- OpenFold-like feature sizes (c_z=128, no_bins=64 -> fold=2), small M.
    c_z3, no_bins3, n3 = 128, 64, 16
    z3 = jax.random.normal(kz, (1, n3, n3, c_z3), dtype=jnp.float32)
    w3 = 0.02 * jax.random.normal(kw, (no_bins3, c_z3), dtype=jnp.float32)
    b3 = 0.1 * jax.random.normal(kb, (no_bins3,), dtype=jnp.float32)
    logits3 = tm_score_head_forward(z3, w3, b3)
    jax.block_until_ready(logits3)
    assert logits3.shape == (1, n3, n3, no_bins3)
    assert jnp.allclose(logits3, _ref(z3, w3, b3), atol=1e-5, rtol=1e-5)

    print("KERNEL_OK")
</pallas_src>

<mosaic_0001>
module attributes {stable_mosaic.version = 11 : i64} {
  func.func @_tm_linear_kernel(%arg0: i32, %arg1: memref<16x256xf32, #tpu.memory_space<vmem>>, %arg2: memref<256x128xf32, #tpu.memory_space<vmem>>, %arg3: memref<1x128xf32, #tpu.memory_space<vmem>>, %arg4: memref<16x128xf32, #tpu.memory_space<vmem>>) attributes {dimension_semantics = [#tpu.dimension_semantics<parallel>], iteration_bounds = array<i64: 1>, scalar_prefetch = 0 : i64, scratch_operands = 0 : i64, tpu.core_type = #tpu.core_type<tc>, window_params = [{transform_indices = @transform_0, window_bounds = array<i64: 16, 256>}, {pipeline_mode = #tpu.pipeline_mode<synchronous>, transform_indices = @transform_1, window_bounds = array<i64: 256, 128>}, {pipeline_mode = #tpu.pipeline_mode<synchronous>, transform_indices = @transform_2, window_bounds = array<i64: 1, 128>}, {transform_indices = @transform_3, window_bounds = array<i64: 16, 128>}]} {
    %c0 = arith.constant 0 : index
    %c0_0 = arith.constant 0 : index
    %0 = vector.load %arg1[%c0, %c0_0] : memref<16x256xf32, #tpu.memory_space<vmem>>, vector<16x256xf32>
    %c0_1 = arith.constant 0 : index
    %c0_2 = arith.constant 0 : index
    %1 = vector.load %arg2[%c0_1, %c0_2] : memref<256x128xf32, #tpu.memory_space<vmem>>, vector<256x128xf32>
    %cst = arith.constant dense<0.000000e+00> : vector<16x128xf32>
    %2 = tpu.matmul %0, %1, %cst {dimension_numbers = #tpu.dot_dimension_numbers<[1], [0], [0], [1], [0, 0, 1, 1], [], []>} : vector<16x256xf32>, vector<256x128xf32>, vector<16x128xf32> -> vector<16x128xf32>
    %c0_3 = arith.constant 0 : index
    %c0_4 = arith.constant 0 : index
    %3 = vector.load %arg3[%c0_3, %c0_4] : memref<1x128xf32, #tpu.memory_space<vmem>>, vector<1x128xf32>
    %4 = vector.broadcast %3 : vector<1x128xf32> to vector<16x128xf32>
    %5 = arith.addf %2, %4 : vector<16x128xf32>
    %c0_5 = arith.constant 0 : index
    %c0_6 = arith.constant 0 : index
    %6 = vector.load %arg4[%c0_5, %c0_6] : memref<16x128xf32, #tpu.memory_space<vmem>>, vector<16x128xf32>
    tpu.vector_store %arg4[%c0_5, %c0_6], %5 {strides = array<i32>} : memref<16x128xf32, #tpu.memory_space<vmem>>, vector<16x128xf32>,
    return
  }
  func.func @transform_0(%arg0: i32) -> (i32, i32) {
    %c0_i32 = arith.constant 0 : i32
    %c0_i32_0 = arith.constant 0 : i32
    return %arg0, %c0_i32 : i32, i32
  }
  func.func @transform_1(%arg0: i32) -> (i32, i32) {
    %c0_i32 = arith.constant 0 : i32
    %c0_i32_0 = arith.constant 0 : i32
    %c0_i32_1 = arith.constant 0 : i32
    return %c0_i32, %c0_i32_0 : i32, i32
  }
  func.func @transform_2(%arg0: i32) -> (i32, i32) {
    %c0_i32 = arith.constant 0 : i32
    %c0_i32_0 = arith.constant 0 : i32
    %c0_i32_1 = arith.constant 0 : i32
    return %c0_i32, %c0_i32_0 : i32, i32
  }
  func.func @transform_3(%arg0: i32) -> (i32, i32) {
    %c0_i32 = arith.constant 0 : i32
    %c0_i32_0 = arith.constant 0 : i32
    return %arg0, %c0_i32 : i32, i32
  }
}

</mosaic_0001>

<bundles_post_ra>
// kernel: tm_score_head_forward.1
= control target key start
LH: loop header
LB: loop body
LE: loop exit
PB: predicated region body
PF: predicated region fallthrough
CT: control target
= control target key end

     0   :  { %s276_s1 = inlined_call_operand.vmem [shape: f32[256,128], index: 1, kind: input, shape index: {}]   ;;  %s277_s2 = inlined_call_operand.vmem [shape: f32[1,128], index: 2, kind: input, shape index: {}]   ;;  %s278_s0 = inlined_call_operand.vmem [shape: f32[16,256], index: 0, kind: input, shape index: {}]   ;;  %s279_s3 = inlined_call_operand.vmem [shape: f32[16,128], index: 3, kind: output, shape index: {}]  }
   0x1   :  { %v33_v0 = vld [vmem:[%s276_s1 + $0x78] sm:$0xff]  ;;  %v32_v1 = vld [vmem:[%s276_s1 + $0x70] sm:$0xff]  ;;  %v31_v4 = vld [vmem:[%s276_s1 + $0x68] sm:$0xff] }
   0x2   :  { %v49_v2 = vld [vmem:[%s276_s1 + $0xf8] sm:$0xff]  ;;  %106 = vmatpush.msra.mxu2 %v33_v0  ;;  %v48_v3 = vld [vmem:[%s276_s1 + $0xf0] sm:$0xff]  ;;  %54 = vmatpush.msra.mxu0 %v33_v0  ;;  %v47_v5 = vld [vmem:[%s276_s1 + $0xe8] sm:$0xff] }
   0x3   :  { %122 = vmatpush.msra.mxu3 %v49_v2  ;;  %77 = vmatpush.msra.mxu1 %v49_v2  ;;  %v30_v6 = vld [vmem:[%s276_s1 + $0x60] sm:$0xff]  ;;  %v29_v8 = vld [vmem:[%s276_s1 + $0x58] sm:$0xff]  ;;  %v28_v10 = vld [vmem:[%s276_s1 + $0x50] sm:$0xff] }
   0x4   :  { %107 = vmatpush.msra.mxu2 %v32_v1  ;;  %55 = vmatpush.msra.mxu0 %v32_v1  ;;  %v46_v7 = vld [vmem:[%s276_s1 + $0xe0] sm:$0xff]  ;;  %v45_v9 = vld [vmem:[%s276_s1 + $0xd8] sm:$0xff]  ;;  %v44_v11 = vld [vmem:[%s276_s1 + $0xd0] sm:$0xff] }
   0x5   :  { %123 = vmatpush.msra.mxu3 %v48_v3  ;;  %78 = vmatpush.msra.mxu1 %v48_v3  ;;  %v27_v12 = vld [vmem:[%s276_s1 + $0x48] sm:$0xff]  ;;  %v26_v14 = vld [vmem:[%s276_s1 + $0x40] sm:$0xff]  ;;  %v25_v16 = vld [vmem:[%s276_s1 + $0x38] sm:$0xff] }
   0x6   :  { %108 = vmatpush.msra.mxu2 %v31_v4  ;;  %56 = vmatpush.msra.mxu0 %v31_v4  ;;  %v43_v13 = vld [vmem:[%s276_s1 + $0xc8] sm:$0xff]  ;;  %v42_v15 = vld [vmem:[%s276_s1 + $0xc0] sm:$0xff]  ;;  %v41_v17 = vld [vmem:[%s276_s1 + $0xb8] sm:$0xff] }
   0x7   :  { %124 = vmatpush.msra.mxu3 %v47_v5  ;;  %79 = vmatpush.msra.mxu1 %v47_v5  ;;  %v24_v18 = vld [vmem:[%s276_s1 + $0x30] sm:$0xff]  ;;  %v23_v20 = vld [vmem:[%s276_s1 + $0x28] sm:$0xff]  ;;  %v22_v22 = vld [vmem:[%s276_s1 + $0x20] sm:$0xff] }
   0x8   :  { %109 = vmatpush.msra.mxu2 %v30_v6  ;;  %57 = vmatpush.msra.mxu0 %v30_v6  ;;  %v40_v19 = vld [vmem:[%s276_s1 + $0xb0] sm:$0xff]  ;;  %v39_v21 = vld [vmem:[%s276_s1 + $0xa8] sm:$0xff]  ;;  %v38_v23 = vld [vmem:[%s276_s1 + $0xa0] sm:$0xff] }
   0x9   :  { %125 = vmatpush.msra.mxu3 %v46_v7  ;;  %80 = vmatpush.msra.mxu1 %v46_v7  ;;  %v21_v24 = vld [vmem:[%s276_s1 + $0x18] sm:$0xff]  ;;  %v20_v26 = vld [vmem:[%s276_s1 + $0x10] sm:$0xff]  ;;  %v19_v28 = vld [vmem:[%s276_s1 + $0x8] sm:$0xff] }
   0xa   :  { %110 = vmatpush.msra.mxu2 %v29_v8  ;;  %58 = vmatpush.msra.mxu0 %v29_v8  ;;  %v37_v25 = vld [vmem:[%s276_s1 + $0x98] sm:$0xff]  ;;  %v36_v27 = vld [vmem:[%s276_s1 + $0x90] sm:$0xff]  ;;  %v35_v29 = vld [vmem:[%s276_s1 + $0x88] sm:$0xff] }
   0xb   :  { %126 = vmatpush.msra.mxu3 %v45_v9  ;;  %81 = vmatpush.msra.mxu1 %v45_v9  ;;  %v18_v30 = vld [vmem:[%s276_s1] sm:$0xff]  ;;  %v16_v32 = vld [vmem:[%s278_s0 + $0x10] sm:$0xff]  ;;  %v17_v33 = vld [vmem:[%s278_s0 + $0x18] sm:$0xff] }
   0xc   :  { %111 = vmatpush.msra.mxu2 %v28_v10  ;;  %59 = vmatpush.msra.mxu0 %v28_v10  ;;  %v34_v31 = vld [vmem:[%s276_s1 + $0x80] sm:$0xff]  ;;  %v15_v35 = vld [vmem:[%s278_s0 + $0x8] sm:$0xff] }
   0xd   :  { %127 = vmatpush.msra.mxu3 %v44_v11  ;;  %82 = vmatpush.msra.mxu1 %v44_v11  ;;  %v14_v34 = vld [vmem:[%s278_s0] sm:$0xff] }
   0xe   :  { %112 = vmatpush.msra.mxu2 %v27_v12  ;;  %60 = vmatpush.msra.mxu0 %v27_v12  ;;  %v138_v36 = vld [vmem:[%s277_s2] ss:$0 sm:$0xff] }
   0xf   :  { %128 = vmatpush.msra.mxu3 %v43_v13  ;;  %83 = vmatpush.msra.mxu1 %v43_v13 }
  0x10   :  { %113 = vmatpush.msra.mxu2 %v26_v14  ;;  %61 = vmatpush.msra.mxu0 %v26_v14 }
  0x11   :  { %129 = vmatpush.msra.mxu3 %v42_v15  ;;  %84 = vmatpush.msra.mxu1 %v42_v15 }
  0x12   :  { %114 = vmatpush.msra.mxu2 %v25_v16  ;;  %62 = vmatpush.msra.mxu0 %v25_v16 }
  0x13   :  { %130 = vmatpush.msra.mxu3 %v41_v17  ;;  %85 = vmatpush.msra.mxu1 %v41_v17 }
  0x14   :  { %115 = vmatpush.msra.mxu2 %v24_v18  ;;  %63 = vmatpush.msra.mxu0 %v24_v18 }
  0x15   :  { %131 = vmatpush.msra.mxu3 %v40_v19  ;;  %86 = vmatpush.msra.mxu1 %v40_v19 }
  0x16   :  { %116 = vmatpush.msra.mxu2 %v23_v20  ;;  %64 = vmatpush.msra.mxu0 %v23_v20 }
  0x17   :  { %132 = vmatpush.msra.mxu3 %v39_v21  ;;  %87 = vmatpush.msra.mxu1 %v39_v21 }
  0x18   :  { %117 = vmatpush.msra.mxu2 %v22_v22  ;;  %65 = vmatpush.msra.mxu0 %v22_v22 }
  0x19   :  { %133 = vmatpush.msra.mxu3 %v38_v23  ;;  %88 = vmatpush.msra.mxu1 %v38_v23 }
  0x1a   :  { %118 = vmatpush.msra.mxu2 %v21_v24  ;;  %66 = vmatpush.msra.mxu0 %v21_v24 }
  0x1b   :  { %134 = vmatpush.msra.mxu3 %v37_v25  ;;  %89 = vmatpush.msra.mxu1 %v37_v25 }
  0x1c   :  { %119 = vmatpush.msra.mxu2 %v20_v26  ;;  %67 = vmatpush.msra.mxu0 %v20_v26 }
  0x1d   :  { %135 = vmatpush.msra.mxu3 %v36_v27  ;;  %90 = vmatpush.msra.mxu1 %v36_v27 }
  0x1e   :  { %120 = vmatpush.msra.mxu2 %v19_v28  ;;  %68 = vmatpush.msra.mxu0 %v19_v28 }
  0x1f   :  { %136 = vmatpush.msra.mxu3 %v35_v29  ;;  %91 = vmatpush.msra.mxu1 %v35_v29 }
  0x20   :  { %121 = vmatpush.msra.mxu2 %v18_v30  ;;  %69 = vmatpush.msra.mxu0 %v18_v30 }
  0x21   :  { %137 = vmatpush.msra.mxu3 %v34_v31  ;;  %73 = vmatmul.f32.vlgmr.msra.gmra.mxu2 %v16_v32 }
  0x22   :  { %96 = vmatmul.f32.vlgmr.msra.gmra.mxu3 %v17_v33  ;;  %92 = vmatpush.msra.mxu1 %v34_v31 }
  0x23   :  { %70 = vmatmul.f32.vlgmr.msra.gmra.mxu0 %v14_v34  ;;  %93 = vmatmul.f32.vlgmr.msra.gmra.mxu1 %v15_v35 }
  0xa0   :  { %v71_v37 = vpop.f32.mrf.mxu0  ;;  %v94_v38 = vpop.f32.mrf.mxu1 }
  0xa1   :  { %v72_v39 = vadd.f32 %v138_v36, %v71_v37 }
  0xa3   :  { %v95_v40 = vadd.f32 %v94_v38, %v72_v39 }
  0xa4   :  { %v74_v41 = vpop.f32.mrf.mxu2 }
  0xa5   :  { %v97_v42 = vpop.f32.mrf.mxu3  ;;  %v75_v43 = vadd.f32 %v138_v36, %v74_v41  ;;  %100 = vst [vmem:[%s279_s3] sm:$0xff] %v95_v40 }
  0xa7   :  { %v98_v44 = vadd.f32 %v97_v42, %v75_v43 }
  0xa9   :  { %101 = vst [vmem:[%s279_s3 + $0x8] sm:$0xff] %v98_v44 }

</bundles_post_ra>
